<compile_context>
chip_gen: v7x
topology: tpu7x:2x2x1
jax: 0.10.0
libtpu: 0.0.40
codegen_flags: <defaults>
</compile_context>

<pallas_src>
import functools
import math

import jax
import jax.numpy as jnp
from jax import lax
from jax.experimental import pallas as pl
from jax.experimental.pallas import tpu as pltpu

_LANES = 128
# 2048 rows x 128 lanes x 4 B = 1 MiB per f32 buffer; in+out, double-buffered
# => ~4 MiB VMEM, comfortably within every generation's scoped default.
_MAX_BLOCK_ROWS = 2048

_TWO_PI = 2.0 * math.pi
_INV_2POW24 = 1.0 / float(1 << 24)


def _lowbias32(x):
    """Avalanching 32-bit integer hash (lowbias32); bijective on uint32."""
    x = x ^ (x >> 16)
    x = x * jnp.uint32(0x7FEB352D)
    x = x ^ (x >> 15)
    x = x * jnp.uint32(0x846CA68B)
    x = x ^ (x >> 16)
    return x


def _gaussian_noise_kernel(seed_ref, x_ref, o_ref, *, stddev, block_rows):
    """o = x + N(0,1)*stddev with counter-based in-kernel RNG (Box-Muller)."""
    shape = x_ref.shape  # (block_rows, 128)

    # Unique 32-bit counter per element of the whole (rows, 128) slab.
    block = pl.program_id(0).astype(jnp.uint32)
    row = lax.broadcasted_iota(jnp.uint32, shape, 0) + block * jnp.uint32(block_rows)
    lane = lax.broadcasted_iota(jnp.uint32, shape, 1)
    idx = row * jnp.uint32(_LANES) + lane

    # Hash the user seed (multiplicative avalanche) so adjacent seeds give
    # unrelated streams, then derive two independent bit-streams per element.
    seed = _lowbias32(seed_ref[0].astype(jnp.uint32) + jnp.uint32(0x9E3779B9))
    bits1 = _lowbias32(idx ^ seed)
    bits2 = _lowbias32(bits1 + jnp.uint32(0x9E3779B9))

    # 24-bit uniforms: u1 in (0, 1] (safe for log), u2 in [0, 1).
    u1 = ((bits1 >> 8).astype(jnp.int32) + 1).astype(jnp.float32) * jnp.float32(_INV_2POW24)
    u2 = (bits2 >> 8).astype(jnp.int32).astype(jnp.float32) * jnp.float32(_INV_2POW24)

    # Box-Muller -> standard normal.  (log/sqrt/cos ride the EUP slot; on v5e
    # this could bind before HBM for very large tiles, acceptable here.)
    r = jnp.sqrt(jnp.float32(-2.0) * jnp.log(u1))
    noise = r * jnp.cos(jnp.float32(_TWO_PI) * u2)

    x = x_ref[...].astype(jnp.float32)
    o_ref[...] = (x + noise * jnp.float32(stddev)).astype(o_ref.dtype)


def gaussian_noise_layer(x, *, stddev=0.01, seed=0, training=True):
    """Pallas TPU equivalent of GaussianNoiseLayer.forward.

    Pass a different `seed` each training step to re-draw noise per forward
    pass (matching torch.randn_like semantics).
    """
    if not training:
        return x  # eval mode: exact identity

    orig_shape = x.shape
    orig_dtype = x.dtype

    flat = x.reshape(-1)
    total = flat.shape[0]

    # Lane-pad only when total is not a multiple of 128; row padding up to the
    # block size is handled by Pallas boundary masking (no extra HBM pass).
    rem = total % _LANES
    padded_total = total if rem == 0 else total + (_LANES - rem)
    if padded_total != total:
        flat = jnp.pad(flat, (0, padded_total - total))
    rows = padded_total // _LANES
    slab = flat.reshape(rows, _LANES)

    # Whole slab as one block if small, otherwise ~1 MiB (2048, 128) tiles.
    block_rows = rows if rows <= _MAX_BLOCK_ROWS else _MAX_BLOCK_ROWS
    grid = (pl.cdiv(rows, block_rows),)

    seed_arr = jnp.asarray([seed], dtype=jnp.int32)
    kernel = functools.partial(
        _gaussian_noise_kernel, stddev=float(stddev), block_rows=block_rows
    )

    out_slab = pl.pallas_call(
        kernel,
        out_shape=jax.ShapeDtypeStruct((rows, _LANES), orig_dtype),
        grid_spec=pltpu.PrefetchScalarGridSpec(
            num_scalar_prefetch=1,
            grid=grid,
            in_specs=[pl.BlockSpec((block_rows, _LANES), lambda i, seed_ref: (i, 0))],
            out_specs=pl.BlockSpec((block_rows, _LANES), lambda i, seed_ref: (i, 0)),
        ),
        compiler_params=pltpu.CompilerParams(
            # Counter-based RNG => blocks are fully independent; let the grid
            # shard across v7x's two TensorCores (no-op on v5e/v6e).
            dimension_semantics=("parallel",),
        ),
    )(seed_arr, slab)

    out_flat = out_slab.reshape(-1)
    if padded_total != total:
        out_flat = out_flat[:total]
    return out_flat.reshape(orig_shape)


if __name__ == "__main__":
    key = jax.random.PRNGKey(0)
    # NCHW input, small shapes: batch=2, channels=4, spatial=16x16
    x = jax.random.normal(key, (2, 4, 16, 16), dtype=jnp.float32)

    stddev = 0.01

    # Training-mode forward (noise generated & added inside the Pallas kernel).
    y_train = gaussian_noise_layer(x, stddev=stddev, seed=1234, training=True)
    y_train = jax.block_until_ready(y_train)

    # Eval-mode forward (identity).
    y_eval = gaussian_noise_layer(x, stddev=stddev, training=False)
    y_eval = jax.block_until_ready(y_eval)

    # Sanity checks: eval is exact identity; train output differs from x only
    # by noise whose magnitude is consistent with stddev=0.01.
    assert y_train.shape == x.shape and y_train.dtype == x.dtype
    assert bool(jnp.all(y_eval == x))
    diff = y_train - x
    max_abs = float(jnp.max(jnp.abs(diff)))
    std_est = float(jnp.std(diff))
    mean_est = float(jnp.mean(diff))
    assert max_abs > 0.0, "noise was not applied in training mode"
    assert max_abs < 10.0 * stddev, f"noise too large: {max_abs}"
    assert 0.25 * stddev < std_est < 4.0 * stddev, f"noise std off: {std_est}"
    assert abs(mean_est) < 2.0 * stddev, f"noise mean off: {mean_est}"

    print("KERNEL_OK")
</pallas_src>

<mosaic_0001>
module attributes {stable_mosaic.version = 11 : i64} {
  func.func @_gaussian_noise_kernel(%arg0: i32, %arg1: memref<1xi32, #tpu.memory_space<smem>>, %arg2: memref<16x128xf32, #tpu.memory_space<vmem>>, %arg3: memref<16x128xf32, #tpu.memory_space<vmem>>) attributes {dimension_semantics = [#tpu.dimension_semantics<parallel>], iteration_bounds = array<i64: 1>, scalar_prefetch = 1 : i64, scratch_operands = 0 : i64, tpu.core_type = #tpu.core_type<tc>, window_params = [{transform_indices = @transform_0, window_bounds = array<i64: 16, 128>}, {transform_indices = @transform_1, window_bounds = array<i64: 16, 128>}]} {
    %0 = tpu.iota {dimensions = array<i32: 0>} : vector<16x128xi32>
    %c16_i32 = arith.constant 16 : i32
    %1 = arith.muli %arg0, %c16_i32 : i32
    %2 = vector.broadcast %1 : i32 to vector<16x128xi32>
    %3 = arith.addi %0, %2 : vector<16x128xi32>
    %4 = tpu.iota {dimensions = array<i32: 1>} : vector<16x128xi32>
    %c128_i32 = arith.constant 128 : i32
    %5 = vector.broadcast %c128_i32 : i32 to vector<16x128xi32>
    %6 = arith.muli %3, %5 : vector<16x128xi32>
    %7 = arith.addi %6, %4 : vector<16x128xi32>
    %c0 = arith.constant 0 : index
    %8 = memref.load %arg1[%c0] : memref<1xi32, #tpu.memory_space<smem>>
    %c-1640531527_i32 = arith.constant -1640531527 : i32
    %9 = arith.addi %8, %c-1640531527_i32 : i32
    %c16_i32_0 = arith.constant 16 : i32
    %10 = arith.shrui %9, %c16_i32_0 : i32
    %11 = arith.xori %9, %10 : i32
    %c2146121005_i32 = arith.constant 2146121005 : i32
    %12 = arith.muli %11, %c2146121005_i32 : i32
    %c15_i32 = arith.constant 15 : i32
    %13 = arith.shrui %12, %c15_i32 : i32
    %14 = arith.xori %12, %13 : i32
    %c-2073254261_i32 = arith.constant -2073254261 : i32
    %15 = arith.muli %14, %c-2073254261_i32 : i32
    %c16_i32_1 = arith.constant 16 : i32
    %16 = arith.shrui %15, %c16_i32_1 : i32
    %17 = arith.xori %15, %16 : i32
    %18 = vector.broadcast %17 : i32 to vector<16x128xi32>
    %19 = arith.xori %7, %18 : vector<16x128xi32>
    %c16_i32_2 = arith.constant 16 : i32
    %20 = vector.broadcast %c16_i32_2 : i32 to vector<16x128xi32>
    %21 = arith.shrui %19, %20 : vector<16x128xi32>
    %22 = arith.xori %19, %21 : vector<16x128xi32>
    %c2146121005_i32_3 = arith.constant 2146121005 : i32
    %23 = vector.broadcast %c2146121005_i32_3 : i32 to vector<16x128xi32>
    %24 = arith.muli %22, %23 : vector<16x128xi32>
    %c15_i32_4 = arith.constant 15 : i32
    %25 = vector.broadcast %c15_i32_4 : i32 to vector<16x128xi32>
    %26 = arith.shrui %24, %25 : vector<16x128xi32>
    %27 = arith.xori %24, %26 : vector<16x128xi32>
    %c-2073254261_i32_5 = arith.constant -2073254261 : i32
    %28 = vector.broadcast %c-2073254261_i32_5 : i32 to vector<16x128xi32>
    %29 = arith.muli %27, %28 : vector<16x128xi32>
    %c16_i32_6 = arith.constant 16 : i32
    %30 = vector.broadcast %c16_i32_6 : i32 to vector<16x128xi32>
    %31 = arith.shrui %29, %30 : vector<16x128xi32>
    %32 = arith.xori %29, %31 : vector<16x128xi32>
    %c-1640531527_i32_7 = arith.constant -1640531527 : i32
    %33 = vector.broadcast %c-1640531527_i32_7 : i32 to vector<16x128xi32>
    %34 = arith.addi %32, %33 : vector<16x128xi32>
    %c16_i32_8 = arith.constant 16 : i32
    %35 = vector.broadcast %c16_i32_8 : i32 to vector<16x128xi32>
    %36 = arith.shrui %34, %35 : vector<16x128xi32>
    %37 = arith.xori %34, %36 : vector<16x128xi32>
    %c2146121005_i32_9 = arith.constant 2146121005 : i32
    %38 = vector.broadcast %c2146121005_i32_9 : i32 to vector<16x128xi32>
    %39 = arith.muli %37, %38 : vector<16x128xi32>
    %c15_i32_10 = arith.constant 15 : i32
    %40 = vector.broadcast %c15_i32_10 : i32 to vector<16x128xi32>
    %41 = arith.shrui %39, %40 : vector<16x128xi32>
    %42 = arith.xori %39, %41 : vector<16x128xi32>
    %c-2073254261_i32_11 = arith.constant -2073254261 : i32
    %43 = vector.broadcast %c-2073254261_i32_11 : i32 to vector<16x128xi32>
    %44 = arith.muli %42, %43 : vector<16x128xi32>
    %c16_i32_12 = arith.constant 16 : i32
    %45 = vector.broadcast %c16_i32_12 : i32 to vector<16x128xi32>
    %46 = arith.shrui %44, %45 : vector<16x128xi32>
    %47 = arith.xori %44, %46 : vector<16x128xi32>
    %c8_i32 = arith.constant 8 : i32
    %48 = vector.broadcast %c8_i32 : i32 to vector<16x128xi32>
    %49 = arith.shrui %32, %48 : vector<16x128xi32>
    %c1_i32 = arith.constant 1 : i32
    %50 = vector.broadcast %c1_i32 : i32 to vector<16x128xi32>
    %51 = arith.addi %49, %50 : vector<16x128xi32>
    %52 = arith.sitofp %51 : vector<16x128xi32> to vector<16x128xf32>
    %cst = arith.constant 5.96046448E-8 : f32
    %53 = vector.broadcast %cst : f32 to vector<16x128xf32>
    %54 = arith.mulf %52, %53 : vector<16x128xf32>
    %c8_i32_13 = arith.constant 8 : i32
    %55 = vector.broadcast %c8_i32_13 : i32 to vector<16x128xi32>
    %56 = arith.shrui %47, %55 : vector<16x128xi32>
    %57 = arith.sitofp %56 : vector<16x128xi32> to vector<16x128xf32>
    %cst_14 = arith.constant 5.96046448E-8 : f32
    %58 = vector.broadcast %cst_14 : f32 to vector<16x128xf32>
    %59 = arith.mulf %57, %58 : vector<16x128xf32>
    %60 = math.log %54 : vector<16x128xf32>
    %cst_15 = arith.constant -2.000000e+00 : f32
    %61 = vector.broadcast %cst_15 : f32 to vector<16x128xf32>
    %62 = arith.mulf %61, %60 : vector<16x128xf32>
    %63 = math.sqrt %62 : vector<16x128xf32>
    %cst_16 = arith.constant 6.28318548 : f32
    %64 = vector.broadcast %cst_16 : f32 to vector<16x128xf32>
    %65 = arith.mulf %64, %59 : vector<16x128xf32>
    %66 = math.cos %65 : vector<16x128xf32>
    %67 = arith.mulf %63, %66 : vector<16x128xf32>
    %c0_17 = arith.constant 0 : index
    %c0_18 = arith.constant 0 : index
    %68 = vector.load %arg2[%c0_17, %c0_18] : memref<16x128xf32, #tpu.memory_space<vmem>>, vector<16x128xf32>
    %cst_19 = arith.constant 0.00999999977 : f32
    %69 = vector.broadcast %cst_19 : f32 to vector<16x128xf32>
    %70 = arith.mulf %67, %69 : vector<16x128xf32>
    %71 = arith.addf %68, %70 : vector<16x128xf32>
    %c0_20 = arith.constant 0 : index
    %c0_21 = arith.constant 0 : index
    %72 = vector.load %arg3[%c0_20, %c0_21] : memref<16x128xf32, #tpu.memory_space<vmem>>, vector<16x128xf32>
    tpu.vector_store %arg3[%c0_20, %c0_21], %71 {strides = array<i32>} : memref<16x128xf32, #tpu.memory_space<vmem>>, vector<16x128xf32>,
    return
  }
  func.func @transform_0(%arg0: i32, %arg1: memref<1xi32, #tpu.memory_space<smem>>) -> (i32, i32) {
    %c0_i32 = arith.constant 0 : i32
    %c0_i32_0 = arith.constant 0 : i32
    return %arg0, %c0_i32 : i32, i32
  }
  func.func @transform_1(%arg0: i32, %arg1: memref<1xi32, #tpu.memory_space<smem>>) -> (i32, i32) {
    %c0_i32 = arith.constant 0 : i32
    %c0_i32_0 = arith.constant 0 : i32
    return %arg0, %c0_i32 : i32, i32
  }
}

</mosaic_0001>

<bundles_post_ra>
// kernel: tpu_custom_call.1
= control target key start
LH: loop header
LB: loop body
LE: loop exit
PB: predicated region body
PF: predicated region fallthrough
CT: control target
= control target key end

     0   :  { %8 = vsyncpa [#allocation5], 0  ;;  %s618_s0 = inlined_call_operand.<no memory space> [shape: s32[1], index: 0, kind: input, shape index: {}]   ;;  %s619_s1 = inlined_call_operand.hbm [shape: f32[16,128], index: 1, kind: input, shape index: {}]   ;;  %s620_s2 = inlined_call_operand.hbm [shape: f32[16,128], index: 2, kind: output, shape index: {}]  }
   0x1   :  { %9 = vsyncpa [#allocation6], 0  ;;  %s444_s9 = smov [#allocation4]   ;;  %s396_s13 = scalar_lea.hbm %s619_s1, 256 }
   0x2   :  { %s15_s10 = sshll.u32 %s444_s9, 4  ;;  %p397_p0 = scmp.ne.s32.totalorder %s619_s1, %s396_s13  ;;  %s16_s10 = int_to_ptr.vmem [resolvable:$true] %s15_s10 }
   0x3   :  { %p400_p1 = scmp.lt.u32.totalorder %s396_s13, %s619_s1 }
   0x5   :  { %p402_p2 = pnand %p400_p1, %p397_p0 }
   0x7   :  { %405 = shalt.err (!%p402_p2)
}
   0x8   :  { %s406_s18 = scalar_lea.vmem %s16_s10, 256  ;;  %p411_p4 = scmp.lt.s32.totalorder %s16_s10, %s16_s10 }
   0x9   :  { %p407_p3 = scmp.ne.s32.totalorder %s16_s10, %s406_s18  ;;  %p412_p5 = scmp.lt.s32.totalorder %s406_s18, %s406_s18 }
   0xb   :  { %p413_p6 = por %p412_p5, %p411_p4 }
   0xd   :  { %p414_p7 = pnand %p413_p6, %p407_p3 }
   0xf   :  { %417 = shalt.err (!%p414_p7)
}
  0x10   :  { %s445_s19 = smov 128   ;;  %s446_s20 = smov 8  }
  0x11   :  { %21 = dma.hbm_to_vmem [thread:$0]  %s619_s1, 256, %s16_s10, [#allocation5], %s445_s19, %s445_s19, %s446_s20  }
  0x12   :  { %440 = dma.done.wait [#allocation5], 256  }
  0x13   :  { %441 = vsyncadd [#allocation5], 4294967040  ;;  %v25_v0 = vlaneseq  ;;  %s39_s25 = sadd.s32 2654435769, %s618_s0  ;;  %s453_s0 = smov [#allocation7]  }
  0x14   :  { %s40_s26 = sshrl.u32 %s39_s25, 16  ;;  %s342_s5 = sshll.u32 %s453_s0, 4  ;;  %s343_s5 = int_to_ptr.vmem [resolvable:$true] %s342_s5 }
  0x15   :  { %v26_v1 = vshrl.u32 %v25_v0, 7  ;;  %s41_s27 = sxor.u32 %s40_s26, %s39_s25  ;;  %v33_v3 = vand.u32 127, %v25_v0  ;;  %s418_s6 = scalar_lea.vmem %s343_s5, 256 }
  0x16   :  { %s42_s28 = smul.u32 2146121005, %s41_s27  ;;  %p419_p8 = scmp.ne.s32.totalorder %s343_s5, %s418_s6 }
  0x17   :  { %v27_v2 = vadd.s32 8, %v26_v1  ;;  %v34_v4 = vmul.u32 128, %v26_v1  ;;  %p423_p9 = scmp.lt.s32.totalorder %s343_s5, %s343_s5  ;;  %p424_p10 = scmp.lt.s32.totalorder %s418_s6, %s418_s6 }
  0x18   :  { %s43_s29 = sshrl.u32 %s42_s28, 15 }
  0x19   :  { %v35_v5 = vmul.u32 128, %v27_v2  ;;  %s44_s30 = sxor.u32 %s43_s29, %s42_s28  ;;  %v36_v6 = vadd.s32 %v34_v4, %v33_v3  ;;  %p425_p11 = por %p424_p10, %p423_p9 }
  0x1a   :  { %s45_s3 = smul.u32 2221713035, %s44_s30 }
  0x1b   :  { %v37_v7 = vadd.s32 %v35_v5, %v33_v3  ;;  %p426_p12 = pnand %p425_p11, %p419_p8 }
  0x1c   :  { %s46_s1 = sshrl.u32 %s45_s3, 16 }
  0x1d   :  { %s47_s4 = sxor.u32 %s46_s1, %s45_s3 }
  0x1e   :  { %v48_v8 = vstv %s47_s4 }
  0x1f   :  { %v49_v9 = vxor.u32 %v48_v8, %v36_v6  ;;  %v50_v10 = vxor.u32 %v48_v8, %v37_v7 }
  0x21   :  { %v51_v11 = vshrl.u32 %v49_v9, 16  ;;  %v52_v12 = vshrl.u32 %v50_v10, 16 }
  0x23   :  { %v53_v13 = vxor.u32 %v51_v11, %v49_v9  ;;  %v54_v14 = vxor.u32 %v52_v12, %v50_v10  ;;  %v447_v11 = vmov 683565275  }
  0x25   :  { %v55_v15 = vmul.u32 2146121005, %v53_v13  ;;  %v56_v16 = vmul.u32 2146121005, %v54_v14  ;;  %v448_v13 = vmov 2475754826  }
  0x27   :  { %v57_v17 = vshrl.u32 %v55_v15, 15  ;;  %v58_v18 = vshrl.u32 %v56_v16, 15 }
  0x29   :  { %v59_v19 = vxor.u32 %v57_v17, %v55_v15  ;;  %v60_v20 = vxor.u32 %v58_v18, %v56_v16  ;;  %v449_v15 = vmov 2131351028   ;;  %v450_v17 = vmov 2102212464  }
  0x2b   :  { %v61_v21 = vmul.u32 2221713035, %v59_v19  ;;  %v62_v22 = vmul.u32 2221713035, %v60_v20  ;;  %v451_v19 = vmov 920167782  }
  0x2d   :  { %v63_v23 = vshrl.u32 %v61_v21, 16  ;;  %v64_v24 = vshrl.u32 %v62_v22, 16 }
  0x2f   :  { %v65_v25 = vxor.u32 %v63_v23, %v61_v21  ;;  %v487_v26 = vxor.u32 %v64_v24, %v62_v22 }
  0x31   :  { %v67_v27 = vadd.s32 2654435769, %v65_v25  ;;  %v68_v28 = vadd.s32 2654435769, %v487_v26  ;;  %v85_v57 = vshrl.u32 %v65_v25, 8 }
  0x33   :  { %v69_v29 = vshrl.u32 %v67_v27, 16  ;;  %v70_v30 = vshrl.u32 %v68_v28, 16  ;;  %v500_v0 = vadd.s32 1, %v85_v57 }
  0x35   :  { %v71_v31 = vxor.u32 %v69_v29, %v67_v27  ;;  %v72_v32 = vxor.u32 %v70_v30, %v68_v28  ;;  %v89_v7 = vcvt.s32.f32 %v500_v0  ;;  %v452_v28 = vmov 1326507024  }
  0x37   :  { %v73_v33 = vmul.u32 2146121005, %v71_v31  ;;  %v74_v34 = vmul.u32 2146121005, %v72_v32 }
  0x39   :  { %v75_v35 = vshrl.u32 %v73_v33, 15  ;;  %v76_v36 = vshrl.u32 %v74_v34, 15 }
  0x3b   :  { %v77_v37 = vxor.u32 %v75_v35, %v73_v33  ;;  %v78_v38 = vxor.u32 %v76_v36, %v74_v34 }
  0x3d   :  { %v79_v39 = vmul.u32 2221713035, %v77_v37  ;;  %v80_v40 = vmul.u32 2221713035, %v78_v38 }
  0x3f   :  { %v81_v41 = vshrl.u32 %v79_v39, 16  ;;  %v82_v42 = vshrl.u32 %v80_v40, 16 }
  0x41   :  { %v83_v43 = vxor.u32 %v81_v41, %v79_v39  ;;  %v84_v44 = vxor.u32 %v82_v42, %v80_v40 }
  0x43   :  { %v93_v45 = vshrl.u32 %v83_v43, 8  ;;  %v94_v46 = vshrl.u32 %v84_v44, 8 }
  0x45   :  { %v95_v47 = vcvt.s32.f32 %v93_v45  ;;  %v96_v48 = vcvt.s32.f32 %v94_v46 }
  0x47   :  { %v97_v49 = vmul.f32 5.9604645e-08, %v95_v47  ;;  %v98_v50 = vmul.f32 5.9604645e-08, %v96_v48 }
  0x49   :  { %v490_v51 = vmul.f32 6.2831855, %v97_v49  ;;  %v492_v52 = vmul.f32 6.2831855, %v98_v50 }
  0x4b   :  { %v121_v53 = vand.u32 2147483647, %v490_v51  ;;  %v124_v54 = vand.u32 2139095040, %v490_v51  ;;  %v227_v55 = vand.u32 2139095040, %v492_v52  ;;  %v224_v59 = vand.u32 2147483647, %v492_v52 }
  0x4c   :  { %vm123_vm14 = vcmp.lt.s32.totalorder %v490_v51, 0 }
  0x4d   :  { %v125_v56 = vshrl.u32 %v124_v54, 23  ;;  %v128_v58 = vand.u32 8388607, %v121_v53  ;;  %v228_v60 = vshrl.u32 %v227_v55, 23  ;;  %v504_v2 = vand.u32 8388607, %v224_v59 }
  0x4e   :  { %vm569_vm15 = vcmp.le.f32.partialorder %v121_v53, 0.7853982 }
  0x4f   :  { %v354_v61 = vadd.s32 4294967169, %v125_v56  ;;  %v358_v62 = vadd.s32 4294967169, %v228_v60  ;;  %v129_v1 = vor.u32 8388608, %v128_v58  ;;  %v232_v9 = vor.u32 8388608, %v504_v2 }
  0x51   :  { %v131_v63 = vadd.s32 1, %v354_v61  ;;  %v234_v3 = vadd.s32 1, %v358_v62  ;;  %v507_v8 = vshll.u32 %v129_v1, 8 }
  0x53   :  { %vm132_vm0 = vcmp.gt.s32.totalorder %v131_v63, 0  ;;  %vm235_vm1 = vcmp.gt.s32.totalorder %v234_v3, 0 }
  0x54   :  { %v133_v4 = vsel %vm132_vm0, %v131_v63, 0  ;;  %v236_v21 = vsel %vm235_vm1, %v234_v3, 0  ;;  %vm226_vm0 = vcmp.lt.s32.totalorder %v492_v52, 0 }
  0x55   :  { %v134_v5 = vshrl.u32 %v133_v4, 5  ;;  %v135_v6 = vand.u32 31, %v133_v4  ;;  %v237_v35 = vshrl.u32 %v236_v21, 5  ;;  %v238_v36 = vand.u32 31, %v236_v21 }
  0x57   :  { %v136_v10 = vsub.s32 32, %v135_v6  ;;  %v138_v12 = vshll.u32 %v447_v11, %v135_v6  ;;  %v141_v14 = vshll.u32 %v448_v13, %v135_v6  ;;  %v144_v16 = vshll.u32 %v449_v15, %v135_v6 }
  0x58   :  { %v147_v18 = vshll.u32 %v450_v17, %v135_v6  ;;  %v150_v20 = vshll.u32 %v451_v19, %v135_v6  ;;  %vm153_vm2 = vcmp.lt.s32.totalorder %v134_v5, 1  ;;  %vm154_vm3 = vcmp.lt.s32.totalorder %v134_v5, 2 }
  0x59   :  { %v137_v22 = vshrl.u32 %v447_v11, %v136_v10  ;;  %v139_v23 = vshrl.u32 %v448_v13, %v136_v10  ;;  %v142_v24 = vshrl.u32 %v449_v15, %v136_v10  ;;  %v145_v25 = vshrl.u32 %v450_v17, %v136_v10 }
  0x5a   :  { %v148_v27 = vshrl.u32 %v451_v19, %v136_v10  ;;  %v151_v29 = vshrl.u32 %v452_v28, %v136_v10  ;;  %vm155_vm4 = vcmp.lt.s32.totalorder %v134_v5, 3  ;;  %vm156_vm5 = vcmp.lt.s32.totalorder %v134_v5, 4 }
  0x5b   :  { %v140_v30 = vor.u32 %v139_v23, %v138_v12  ;;  %v143_v31 = vor.u32 %v142_v24, %v141_v14  ;;  %v146_v32 = vor.u32 %v145_v25, %v144_v16  ;;  %v239_v44 = vsub.s32 32, %v238_v36 }
  0x5c   :  { %v149_v33 = vor.u32 %v148_v27, %v147_v18  ;;  %v152_v34 = vor.u32 %v151_v29, %v150_v20  ;;  %v241_v48 = vshll.u32 %v447_v11, %v238_v36  ;;  %v244_v62 = vshll.u32 %v448_v13, %v238_v36 }
  0x5d   :  { %v157_v37 = vsel %vm153_vm2, %v137_v22, %v140_v30  ;;  %v158_v38 = vsel %vm156_vm5, %v146_v32, 2102212464  ;;  %v161_v39 = vsel %vm153_vm2, %v140_v30, %v143_v31  ;;  %v165_v40 = vsel %vm153_vm2, %v143_v31, %v146_v32 }
  0x5e   :  { %v159_v41 = vsel %vm155_vm4, %v143_v31, %v158_v38  ;;  %v162_v42 = vsel %vm156_vm5, %v149_v33, 920167782  ;;  %v166_v43 = vsel %vm156_vm5, %v152_v34, 1326507024  ;;  %v240_v55 = vshrl.u32 %v447_v11, %v239_v44 }
  0x5f   :  { %v160_v45 = vsel %vm154_vm3, %v157_v37, %v159_v41  ;;  %v163_v46 = vsel %vm155_vm4, %v146_v32, %v162_v42  ;;  %v167_v47 = vsel %vm155_vm4, %v149_v33, %v166_v43  ;;  %v242_v61 = vshrl.u32 %v448_v13, %v239_v44 }
  0x60   :  { %v164_v49 = vsel %vm154_vm3, %v161_v39, %v163_v46  ;;  %v168_v50 = vsel %vm154_vm3, %v165_v40, %v167_v47  ;;  %v176_v54 = vmul.u32 %v507_v8, %v160_v45  ;;  %v245_v63 = vshrl.u32 %v449_v15, %v239_v44 }
  0x61   :  { %v522_v56 = vmul.u32.u64.low %v507_v8, %v168_v50  ;;  %v523_v57 = vmul.u32.u64.high %v507_v8, %v168_v50, %v522_v56  ;;  %v526_v58 = vmul.u32.u64.low %v507_v8, %v164_v49  ;;  %v527_v60 = vmul.u32.u64.high %v507_v8, %v164_v49, %v526_v58 }
  0x62   :  { %v247_v1 = vshll.u32 %v449_v15, %v238_v36  ;;  %v248_v3 = vshrl.u32 %v450_v17, %v239_v44  ;;  %v250_v4 = vshll.u32 %v450_v17, %v238_v36  ;;  %v251_v5 = vshrl.u32 %v451_v19, %v239_v44 }
  0x63   :  { %v253_v6 = vshll.u32 %v451_v19, %v238_v36  ;;  %v243_v10 = vor.u32 %v242_v61, %v241_v48  ;;  %v246_v12 = vor.u32 %v245_v63, %v244_v62  ;;  %v254_v11 = vshrl.u32 %v452_v28, %v239_v44 }
  0x64   :  { %vm256_vm6 = vcmp.lt.s32.totalorder %v237_v35, 1  ;;  %vm178_vm7 = vc.u32 %v523_v57, %v526_v58  ;;  %v179_v14 = vadd.s32 1, %v527_v60  ;;  %v249_v8 = vor.u32 %v248_v3, %v247_v1 }
  0x65   :  { %v272_v16 = vshll.u32 %v232_v9, 8  ;;  %v252_v13 = vor.u32 %v251_v5, %v250_v4  ;;  %v255_v18 = vor.u32 %v254_v11, %v253_v6  ;;  %vm257_vm8 = vcmp.lt.s32.totalorder %v237_v35, 2 }
  0x66   :  { %vm258_vm9 = vcmp.lt.s32.totalorder %v237_v35, 3  ;;  %v180_v15 = vsel %vm178_vm7, %v179_v14, %v527_v60  ;;  %vm259_vm10 = vcmp.lt.s32.totalorder %v237_v35, 4  ;;  %v260_v17 = vsel %vm256_vm6, %v240_v55, %v243_v10 }
  0x67   :  { %v264_v19 = vsel %vm256_vm6, %v243_v10, %v246_v12  ;;  %v181_v20 = vadd.s32 %v180_v15, %v176_v54  ;;  %v261_v21 = vsel %vm259_vm10, %v249_v8, 2102212464  ;;  %v265_v22 = vsel %vm259_vm10, %v252_v13, 920167782 }
  0x68   :  { %v268_v23 = vsel %vm256_vm6, %v246_v12, %v249_v8  ;;  %v262_v24 = vsel %vm258_vm9, %v246_v12, %v261_v21  ;;  %v266_v25 = vsel %vm258_vm9, %v249_v8, %v265_v22  ;;  %v269_v2 = vsel %vm259_vm10, %v255_v18, 1326507024 }
  0x69   :  { %v86_v9 = vshrl.u32 %v487_v26, 8  ;;  %v182_v27 = vadd.s32 536870912, %v181_v20  ;;  %v267_v28 = vsel %vm257_vm8, %v264_v19, %v266_v25  ;;  %v270_v29 = vsel %vm258_vm9, %v252_v13, %v269_v2 }
  0x6a   :  { %v263_v30 = vsel %vm257_vm8, %v260_v17, %v262_v24  ;;  %v271_v31 = vsel %vm257_vm8, %v268_v23, %v270_v29  ;;  %v543_v32 = vmul.u32.u64.low %v272_v16, %v267_v28  ;;  %v544_v33 = vmul.u32.u64.high %v272_v16, %v267_v28, %v543_v32 }
  0x6b   :  { %v91_v34 = vmul.f32 5.9604645e-08, %v89_v7  ;;  %v548_v36 = vshrl.u32 %v182_v27, 30  ;;  %v550_v37 = vmul.u32.u64.low %v272_v16, %v271_v31  ;;  %v551_v38 = vmul.u32.u64.high %v272_v16, %v271_v31, %v550_v37 }
  0x6c   :  { %v279_v39 = vmul.u32 %v272_v16, %v263_v30  ;;  %v282_v40 = vadd.s32 1, %v544_v33  ;;  %v88_v41 = vadd.s32 1, %v86_v9  ;;  %v177_v55 = vadd.s32 %v526_v58, %v523_v57 }
  0x6d   :  { %v184_v26 = vshll.u32 %v548_v36, 30  ;;  %380 = vlog2.f32 %v91_v34  ;;  %vm281_vm11 = vc.u32 %v551_v38, %v543_v32  ;;  %v280_v13 = vadd.s32 %v543_v32, %v551_v38 }
  0x6e   :  { %v283_v42 = vsel %vm281_vm11, %v282_v40, %v544_v33  ;;  %v90_v7 = vcvt.s32.f32 %v88_v41  ;;  %v207_v24 = vsub.s32 4, %v548_v36  ;;  %vm585_vm2 = vcmp.le.f32.partialorder %v224_v59, 0.7853982 }
  0x6f   :  { %v185_v35 = vsub.s32 %v181_v20, %v184_v26  ;;  %v284_v0 = vadd.s32 %v283_v42, %v279_v39  ;;  %vm213_vm7 = vweird.f32 %v490_v51 }
  0x70   :  { %v92_v48 = vmul.f32 5.9604645e-08, %v90_v7  ;;  %v208_v31 = vsel %vm123_vm14, %v207_v24, %v548_v36 }
  0x71   :  { %v187_v43 = vsub.s32 0, %v185_v35  ;;  %v285_v45 = vadd.s32 536870912, %v284_v0  ;;  %v210_v37 = vsel %vm569_vm15, 0, %v208_v31 }
  0x72   :  { %382 = vlog2.f32 %v92_v48  ;;  %v214_v40 = vand.u32 3, %v210_v37 }
  0x73   :  { %v355_v44 = vmin.u32 %v187_v43, %v185_v35  ;;  %v557_v47 = vshrl.u32 %v285_v45, 30 }
  0x74   :  { %vm219_vm4 = vcmp.eq.s32.totalorder %v214_v40, 2  ;;  %vm216_vm5 = vcmp.eq.s32.totalorder %v214_v40, 0  ;;  %vm215_vm6 = vcmp.lt.s32.totalorder %v214_v40, 2 }
  0x75   :  { %v189_v46 = vclz %v355_v44  ;;  %v287_v50 = vshll.u32 %v557_v47, 30 }
  0x77   :  { %v356_v49 = vadd.s32 4294967294, %v189_v46  ;;  %v381_v54 = vpop.eup %380  ;;  %v288_v60 = vsub.s32 %v284_v0, %v287_v50 }
  0x78   :  { %v100_v1 = vmul.f32 0.6931472, %v381_v54 }
  0x79   :  { %vm357_vm12 = vcmp.lt.s32.totalorder %v356_v49, 0  ;;  %v290_v3 = vsub.s32 0, %v288_v60 }
  0x7a   :  { %v192_v56 = vsel %vm357_vm12, 0, %v356_v49  ;;  %v562_v11 = vmul.f32 -2.0, %v100_v1  ;;  %v329_v1 = vld [vmem:[#allocation4] sm:$0xff] }
  0x7b   :  { %v193_v61 = vsub.s32 32, %v192_v56  ;;  %v194_v62 = vshll.u32 %v185_v35, %v192_v56  ;;  %v197_v63 = vsub.s32 4294967266, %v192_v56  ;;  %v359_v6 = vmin.u32 %v290_v3, %v288_v60 }
  0x7c   :  { %384 = vrsqrt.f32 %v562_v11  ;;  %v383_v18 = vpop.eup %382  ;;  %vm107_vm1 = vcmp.eq.f32.partialorder %v562_v11, inf  ;;  %v310_v35 = vsub.s32 4, %v557_v47  ;;  %vm109_vm3 = vcmp.eq.f32.partialorder %v562_v11, 0.0 }
  0x7d   :  { %v195_v4 = vshrl.u32 %v177_v55, %v193_v61  ;;  %v198_v5 = vadd.s32 127, %v197_v63  ;;  %v292_v14 = vclz %v359_v6  ;;  %v102_v25 = vmul.f32 0.6931472, %v383_v18  ;;  %v330_v18 = vld [vmem:[#allocation4 + $0x8] sm:$0xff] }
  0x7e   :  { %v110_v7 = vand.u32 2147483648, %v562_v11  ;;  %v311_v46 = vsel %vm226_vm0, %v310_v35, %v557_v47 }
  0x7f   :  { %v196_v10 = vor.u32 %v195_v4, %v194_v62  ;;  %v199_v12 = vshll.u32 %v198_v5, 23  ;;  %v360_v57 = vadd.s32 4294967294, %v292_v14  ;;  %v104_v53 = vmul.f32 -2.0, %v102_v25 }
  0x80   :  { %v313_v55 = vsel %vm585_vm2, 0, %v311_v46 }
  0x81   :  { %v200_v8 = vor.u32 4788187, %v199_v12  ;;  %v203_v16 = vcvt.s32.f32 %v196_v10  ;;  %vm361_vm13 = vcmp.lt.s32.totalorder %v360_v57, 0  ;;  %v317_v62 = vand.u32 3, %v313_v55 }
  0x82   :  { %v295_v17 = vsel %vm361_vm13, 0, %v360_v57  ;;  %vm114_vm8 = vcmp.eq.f32.partialorder %v104_v53, inf  ;;  %v117_v5 = vand.u32 2147483648, %v104_v53  ;;  %vm116_vm10 = vcmp.eq.f32.partialorder %v104_v53, 0.0 }
  0x83   :  { %v201_v58 = vand.u32 2147483647, %v200_v8  ;;  %v296_v19 = vsub.s32 32, %v295_v17  ;;  %v297_v20 = vshll.u32 %v288_v60, %v295_v17  ;;  %v300_v21 = vsub.s32 4294967266, %v295_v17 }
  0x84   :  { %vm322_vm9 = vcmp.eq.s32.totalorder %v317_v62, 2  ;;  %vm319_vm11 = vcmp.eq.s32.totalorder %v317_v62, 0  ;;  %vm318_vm12 = vcmp.lt.s32.totalorder %v317_v62, 2  ;;  %vm316_vm13 = vweird.f32 %v492_v52 }
  0x85   :  { %v204_v15 = vmul.f32 %v203_v16, %v201_v58  ;;  %v298_v2 = vshrl.u32 %v280_v13, %v296_v19  ;;  %v301_v9 = vadd.s32 127, %v300_v21 }
  0x86   :  { %v385_v34 = vpop.eup %384 }
  0x87   :  { %v205_v23 = vxor.u32 2147483648, %v204_v15  ;;  %v299_v29 = vor.u32 %v298_v2, %v297_v20  ;;  %v302_v30 = vshll.u32 %v301_v9, 23  ;;  %v106_v39 = vmul.f32 %v385_v34, %v562_v11 }
  0x89   :  { %v206_v27 = vsel %vm123_vm14, %v205_v23, %v204_v15  ;;  %v303_v32 = vor.u32 4788187, %v302_v30  ;;  %v306_v33 = vcvt.s32.f32 %v299_v29  ;;  %v108_v0 = vsel %vm107_vm1, %v562_v11, %v106_v39 }
  0x8a   :  { %v209_v28 = vsel %vm569_vm15, %v490_v51, %v206_v27  ;;  %v111_v50 = vsel %vm109_vm3, %v110_v7, %v108_v0 }
  0x8b   :  { %386 = vcosq.f32 %v209_v28  ;;  %v304_v38 = vand.u32 2147483647, %v303_v32 }
  0x8c   :  { %388 = vsinq.f32 %v209_v28 }
  0x8d   :  { %390 = vrsqrt.f32 %v104_v53  ;;  %v307_v26 = vmul.f32 %v306_v33, %v304_v38 }
  0x8f   :  { %v308_v41 = vxor.u32 2147483648, %v307_v26 }
  0x91   :  { %v309_v42 = vsel %vm226_vm0, %v308_v41, %v307_v26 }
  0x92   :  { %v312_v44 = vsel %vm585_vm2, %v492_v52, %v309_v42 }
  0x93   :  { %392 = vcosq.f32 %v312_v44 }
  0x94   :  { %394 = vsinq.f32 %v312_v44 }
  0x95   :  { %v387_v43 = vpop.eup %386 }
  0x96   :  { %v389_v59 = vpop.eup %388  ;;  %v220_v45 = vxor.u32 2147483648, %v387_v43 }
  0x97   :  { %v217_v48 = vxor.u32 2147483648, %v389_v59  ;;  %v391_v56 = vpop.eup %390 }
  0x98   :  { %v221_v49 = vsel %vm219_vm4, %v220_v45, %v389_v59  ;;  %v113_v47 = vmul.f32 %v391_v56, %v104_v53 }
  0x99   :  { %v218_v54 = vsel %vm216_vm5, %v387_v43, %v217_v48 }
  0x9a   :  { %v222_v60 = vsel %vm215_vm6, %v218_v54, %v221_v49  ;;  %v115_v10 = vsel %vm114_vm8, %v104_v53, %v113_v47 }
  0x9b   :  { %v223_v61 = vsel %vm213_vm7, nan, %v222_v60  ;;  %v118_v8 = vsel %vm116_vm10, %v117_v5, %v115_v10 }
  0x9c   :  { %v327_v63 = vmul.f32 %v223_v61, %v111_v50 }
  0x9d   :  { %v393_v4 = vpop.eup %392 }
  0x9e   :  { %v331_v3 = vmul.f32 0.01, %v327_v63  ;;  %v395_v6 = vpop.eup %394  ;;  %v323_v12 = vxor.u32 2147483648, %v393_v4 }
  0x9f   :  { %v320_v11 = vxor.u32 2147483648, %v395_v6 }
  0xa0   :  { %v333_v51 = vadd.f32 %v331_v3, %v329_v1  ;;  %v324_v14 = vsel %vm322_vm9, %v323_v12, %v395_v6 }
  0xa1   :  { %v321_v16 = vsel %vm319_vm11, %v393_v4, %v320_v11 }
  0xa2   :  { %335 = vst [vmem:[#allocation7] sm:$0xff] %v333_v51  ;;  %v325_v57 = vsel %vm318_vm12, %v321_v16, %v324_v14 }
  0xa3   :  { %v326_v58 = vsel %vm316_vm13, nan, %v325_v57 }
  0xa4   :  { %v328_v13 = vmul.f32 %v326_v58, %v118_v8 }
  0xa6   :  { %v332_v15 = vmul.f32 0.01, %v328_v13 }
  0xa8   :  { %v334_v17 = vadd.f32 %v332_v15, %v330_v18 }
  0xaa   :  { %336 = vst [vmem:[#allocation7 + $0x8] sm:$0xff] %v334_v17 }
  0xab   :  { %429 = shalt.err (!%p426_p12)
}
  0xac   :  { %s430_s9 = scalar_lea.hbm %s620_s2, 256 }
  0xad   :  { %p431_p13 = scmp.ne.s32.totalorder %s620_s2, %s430_s9  ;;  %p434_p0 = scmp.lt.u32.totalorder %s430_s9, %s620_s2 }
  0xaf   :  { %p436_p1 = pnand %p434_p0, %p431_p13 }
  0xb1   :  { %439 = shalt.err (!%p436_p1)
}
  0xb2   :  { %348 = dma.vmem_to_hbm [thread:$0]  %s343_s5, 256, %s620_s2, [#allocation6], %s445_s19, %s445_s19, %s446_s20  }
  0xb3   :  { %442 = dma.done.wait [#allocation6], 256  }
  0xb4   :  { %443 = vsyncadd [#allocation6], 4294967040 }
  0xb5   :  { %352 = vsyncpa [#allocation5], 1 }
  0xb6   :  { %353 = vsyncpa [#allocation6], 1 }

</bundles_post_ra>
